<compile_context>
chip_gen: v7x
topology: tpu7x:2x2x1
jax: 0.10.0
libtpu: 0.0.40
codegen_flags: <defaults>
</compile_context>

<pallas_src>
from functools import partial

import jax
import jax.numpy as jnp
from jax.experimental import pallas as pl
from jax.experimental.pallas import tpu as pltpu


def _skip_gram_kernel(emb_ref, w_ref, b_ref, out_ref, logp_ref, *, n_ctx):
    # emb_ref: (TB, E)    w_ref: (E, TV)    b_ref: (1, TV) f32
    # out_ref: (TB, TV)   logp_ref: (TB, TV) f32 scratch (persists across grid)
    c = pl.program_id(2)

    @pl.when(c == 0)
    def _():
        logits = jnp.dot(emb_ref[...], w_ref[...],
                         preferred_element_type=jnp.float32) + b_ref[...]
        # Stable log-softmax over the context axis.  All n_ctx context logits
        # are identical (the PyTorch loop recomputes the same linear layer),
        # so the per-element max over context is `logits` itself and the sum
        # is n_ctx * exp(0): a single EUP exp pass.  (Result is exactly
        # -log(n_ctx); kept in the general form on purpose.)
        m = logits
        s = float(n_ctx) * jnp.exp(logits - m)
        logp_ref[...] = logits - (m + jnp.log(s))

    # One dense, unmasked (TB, TV) store per grid step (writeback-bound).
    out_ref[...] = logp_ref[...].astype(out_ref.dtype)


def _pick_vocab_tile(V, batch_tile, emb_dim, w_bytes, out_bytes, budget_bytes):
    """Largest 128-multiple divisor of V whose per-step VMEM footprint fits."""
    if V % 128 != 0:
        return V                                   # small/odd vocab: one lane block
    fallback = 128
    for cand in (8192, 4096, 2048, 1024, 512, 256, 128):
        if V % cand != 0:
            continue
        need = (2 * batch_tile * cand * out_bytes  # double-buffered output block
                + batch_tile * cand * 4            # log-prob scratch (f32)
                + 2 * emb_dim * cand * w_bytes     # double-buffered weight block
                + 2 * 8 * cand * 4)                # bias block (sublane-padded)
        if need <= budget_bytes:
            return cand
        fallback = cand
    return fallback


def skip_gram_forward(x, emb_table, w_t, bias, context_len, *,
                      batch_tile=None, vocab_tile=None, use_bf16=True,
                      out_dtype=jnp.float32):
    """x: (B,) int32 indices. Returns (B, context_len, V) log-probs."""
    B = x.shape[0]
    V, E = emb_table.shape
    assert w_t.shape == (E, V)
    C = int(context_len)

    # Embedding lookup stays as XLA glue (gather): E is tiny and the kernel is
    # HBM-writeback bound, so fusing the gather in-kernel buys nothing.
    emb = jnp.take(emb_table, x, axis=0)                      # (B, E)

    if use_bf16:
        emb_in = emb.astype(jnp.bfloat16)
        w_in = w_t.astype(jnp.bfloat16)
    else:
        emb_in = emb.astype(jnp.float32)
        w_in = w_t.astype(jnp.float32)
    bias2d = bias.reshape(1, V).astype(jnp.float32)
    w_bytes = emb_in.dtype.itemsize
    out_bytes = jnp.dtype(out_dtype).itemsize

    # ---- tile selection (VMEM-aware, generation-safe) -----------------------
    if batch_tile is None:
        batch_tile = B if B <= 256 else 256        # 128-256 is the sweet spot
    batch_tile = max(1, min(batch_tile, B))
    n_b = pl.cdiv(B, batch_tile)

    VMEM_BUDGET = 24 * 1024 * 1024                 # working-set target per step
    if vocab_tile is None:
        vocab_tile = _pick_vocab_tile(V, batch_tile, E, w_bytes, out_bytes,
                                      VMEM_BUDGET)
    assert (V % vocab_tile == 0) or (vocab_tile == V)
    n_v = pl.cdiv(V, vocab_tile)

    # Grid: vocab outer (weight block resident), batch middle, context inner.
    # Note (v7x): for megacore sharding you want n_v * n_b >= 2; with realistic
    # vocab sizes n_v >= 2 so both TensorCores get work.
    grid = (n_v, n_b, C)

    def emb_map(j, i, c):
        return (i, 0)

    def w_map(j, i, c):
        return (0, j)

    def b_map(j, i, c):
        return (0, j)

    def out_map(j, i, c):
        # Flat output is (B, C*V); context only moves the lane-block index.
        return (i, c * n_v + j)

    cost = pl.CostEstimate(
        flops=2 * B * E * V,                       # dot computed once per (i, j)
        transcendentals=B * V,                     # one exp pass per element
        bytes_accessed=int(n_v * B * E * w_bytes   # embeddings re-read per vocab tile
                           + E * V * w_bytes       # fc1 weight read exactly once
                           + V * 4                 # bias
                           + B * C * V * out_bytes),  # log-prob writeback (dominant)
    )

    out_flat = pl.pallas_call(
        partial(_skip_gram_kernel, n_ctx=C),
        out_shape=jax.ShapeDtypeStruct((B, C * V), out_dtype),
        grid_spec=pltpu.PrefetchScalarGridSpec(
            num_scalar_prefetch=0,
            grid=grid,
            in_specs=[
                pl.BlockSpec((batch_tile, E), emb_map),
                pl.BlockSpec((E, vocab_tile), w_map),
                pl.BlockSpec((1, vocab_tile), b_map),
            ],
            out_specs=pl.BlockSpec((batch_tile, vocab_tile), out_map),
            scratch_shapes=[pltpu.VMEM((batch_tile, vocab_tile), jnp.float32)],
        ),
        compiler_params=pltpu.CompilerParams(
            dimension_semantics=("parallel", "parallel", "arbitrary"),
            vmem_limit_bytes=48 * 1024 * 1024),
        cost_estimate=cost,
    )(emb_in, w_in, bias2d)

    # Free, contiguous reshape (no copy, no slice).
    return out_flat.reshape(B, C, V)


if __name__ == "__main__":
    # Small, module-consistent shapes.
    VOCAB = 256            # vocabulary_Size
    EMBED = 32             # embedding_features
    CONTEXT = 4            # context_len
    BATCH = 8
    PADDING_IDX = 0

    key = jax.random.PRNGKey(0)
    k_emb, k_w, k_b, k_x = jax.random.split(key, 4)

    # nn.Embedding default init ~ N(0,1); padding_idx row zeroed.
    emb_table = jax.random.normal(k_emb, (VOCAB, EMBED), dtype=jnp.float32)
    emb_table = emb_table.at[PADDING_IDX].set(0.0)

    # nn.Linear default init ~ U(-1/sqrt(in), 1/sqrt(in)).
    bound = 1.0 / (EMBED ** 0.5)
    fc1_w = jax.random.uniform(k_w, (VOCAB, EMBED), jnp.float32, -bound, bound)
    fc1_b = jax.random.uniform(k_b, (VOCAB,), jnp.float32, -bound, bound)
    w_t = fc1_w.T                                   # (E, V), stored transposed

    x = jax.random.randint(k_x, (BATCH,), 0, VOCAB, dtype=jnp.int32)

    out = skip_gram_forward(x, emb_table, w_t, fc1_b, CONTEXT)
    out = jax.block_until_ready(out)

    # Pure-JAX reference of the PyTorch forward.
    emb = jnp.take(emb_table, x, axis=0)
    logits = emb @ w_t + fc1_b
    stacked = jnp.stack([logits] * CONTEXT, axis=1)            # (B, C, V)
    ref = jax.nn.log_softmax(stacked, axis=1)

    assert out.shape == (BATCH, CONTEXT, VOCAB)
    assert jnp.allclose(out, ref, atol=1e-5, rtol=1e-5)
    print("KERNEL_OK")
</pallas_src>

<mosaic_0001>
module attributes {stable_mosaic.version = 11 : i64} {
  func.func @_skip_gram_kernel(%arg0: i32, %arg1: i32, %arg2: i32, %arg3: memref<8x32xbf16, #tpu.memory_space<vmem>>, %arg4: memref<32x256xbf16, #tpu.memory_space<vmem>>, %arg5: memref<1x256xf32, #tpu.memory_space<vmem>>, %arg6: memref<8x256xf32, #tpu.memory_space<vmem>>, %arg7: memref<8x256xf32, #tpu.memory_space<vmem>>) attributes {dimension_semantics = [#tpu.dimension_semantics<parallel>, #tpu.dimension_semantics<parallel>, #tpu.dimension_semantics<arbitrary>], iteration_bounds = array<i64: 1, 1, 4>, scalar_prefetch = 0 : i64, scratch_operands = 1 : i64, tpu.core_type = #tpu.core_type<tc>, window_params = [{transform_indices = @transform_0, window_bounds = array<i64: 8, 32>}, {transform_indices = @transform_1, window_bounds = array<i64: 32, 256>}, {transform_indices = @transform_2, window_bounds = array<i64: 1, 256>}, {transform_indices = @transform_3, window_bounds = array<i64: 8, 256>}]} {
    %c0_i32 = arith.constant 0 : i32
    %0 = arith.cmpi eq, %arg2, %c0_i32 : i32
    %1 = arith.extui %0 : i1 to i32
    %c0_i32_0 = arith.constant 0 : i32
    %2 = arith.cmpi ne, %1, %c0_i32_0 : i32
    scf.if %2 {
      %c0_4 = arith.constant 0 : index
      %c0_5 = arith.constant 0 : index
      %5 = vector.load %arg3[%c0_4, %c0_5] : memref<8x32xbf16, #tpu.memory_space<vmem>>, vector<8x32xbf16>
      %c0_6 = arith.constant 0 : index
      %c0_7 = arith.constant 0 : index
      %6 = vector.load %arg4[%c0_6, %c0_7] : memref<32x256xbf16, #tpu.memory_space<vmem>>, vector<32x256xbf16>
      %cst = arith.constant dense<0.000000e+00> : vector<8x256xf32>
      %7 = tpu.matmul %5, %6, %cst {dimension_numbers = #tpu.dot_dimension_numbers<[1], [0], [0], [1], [0, 0, 1, 1], [], []>} : vector<8x32xbf16>, vector<32x256xbf16>, vector<8x256xf32> -> vector<8x256xf32>
      %c0_8 = arith.constant 0 : index
      %c0_9 = arith.constant 0 : index
      %8 = vector.load %arg5[%c0_8, %c0_9] : memref<1x256xf32, #tpu.memory_space<vmem>>, vector<1x256xf32>
      %9 = vector.broadcast %8 : vector<1x256xf32> to vector<8x256xf32>
      %10 = arith.addf %7, %9 : vector<8x256xf32>
      %11 = arith.subf %10, %10 : vector<8x256xf32>
      %12 = math.exp %11 : vector<8x256xf32>
      %cst_10 = arith.constant 4.000000e+00 : f32
      %13 = vector.broadcast %cst_10 : f32 to vector<8x256xf32>
      %14 = arith.mulf %13, %12 : vector<8x256xf32>
      %15 = math.log %14 : vector<8x256xf32>
      %16 = arith.addf %10, %15 : vector<8x256xf32>
      %17 = arith.subf %10, %16 : vector<8x256xf32>
      %c0_11 = arith.constant 0 : index
      %c0_12 = arith.constant 0 : index
      %18 = vector.load %arg7[%c0_11, %c0_12] : memref<8x256xf32, #tpu.memory_space<vmem>>, vector<8x256xf32>
      tpu.vector_store %arg7[%c0_11, %c0_12], %17 {strides = array<i32>} : memref<8x256xf32, #tpu.memory_space<vmem>>, vector<8x256xf32>,
    } else {
    }
    %c0 = arith.constant 0 : index
    %c0_1 = arith.constant 0 : index
    %3 = vector.load %arg7[%c0, %c0_1] : memref<8x256xf32, #tpu.memory_space<vmem>>, vector<8x256xf32>
    %c0_2 = arith.constant 0 : index
    %c0_3 = arith.constant 0 : index
    %4 = vector.load %arg6[%c0_2, %c0_3] : memref<8x256xf32, #tpu.memory_space<vmem>>, vector<8x256xf32>
    tpu.vector_store %arg6[%c0_2, %c0_3], %3 {strides = array<i32>} : memref<8x256xf32, #tpu.memory_space<vmem>>, vector<8x256xf32>,
    return
  }
  func.func @transform_0(%arg0: i32, %arg1: i32, %arg2: i32) -> (i32, i32) {
    %c0_i32 = arith.constant 0 : i32
    %c0_i32_0 = arith.constant 0 : i32
    return %arg1, %c0_i32 : i32, i32
  }
  func.func @transform_1(%arg0: i32, %arg1: i32, %arg2: i32) -> (i32, i32) {
    %c0_i32 = arith.constant 0 : i32
    %c0_i32_0 = arith.constant 0 : i32
    return %c0_i32, %arg0 : i32, i32
  }
  func.func @transform_2(%arg0: i32, %arg1: i32, %arg2: i32) -> (i32, i32) {
    %c0_i32 = arith.constant 0 : i32
    %c0_i32_0 = arith.constant 0 : i32
    return %c0_i32, %arg0 : i32, i32
  }
  func.func @transform_3(%arg0: i32, %arg1: i32, %arg2: i32) -> (i32, i32) {
    %c1_i32 = arith.constant 1 : i32
    %0 = arith.muli %arg2, %c1_i32 : i32
    %1 = arith.addi %0, %arg0 : i32
    %c0_i32 = arith.constant 0 : i32
    return %arg1, %1 : i32, i32
  }
}

</mosaic_0001>

<bundles_post_ra>
// kernel: tpu_custom_call.1
= control target key start
LH: loop header
LB: loop body
LE: loop exit
PB: predicated region body
PF: predicated region fallthrough
CT: control target
= control target key end

     0   :  { %8 = vsyncpa [#allocation4], 0  ;;  %s938_s0 = inlined_call_operand.hbm [shape: bf16[8,32], index: 0, kind: input, shape index: {}]   ;;  %s939_s1 = inlined_call_operand.hbm [shape: bf16[32,256], index: 1, kind: input, shape index: {}]   ;;  %s940_s2 = inlined_call_operand.vmem [shape: f32[1,256], index: 2, kind: input, shape index: {}]   ;;  %s941_s3 = inlined_call_operand.hbm [shape: f32[8,1024], index: 3, kind: output, shape index: {}]  }
   0x1   :  { %9 = vsyncpa [#allocation7], 0 }
   0x2   :  { %10 = vsyncpa [#allocation5], 0 }
   0x3   :  { %12 = vsyncpa [#allocation5 + $0x1], 0  ;;  %s749_s12 = smov 0   ;;  %s751_s13 = smov 0  }
   0x4   :  { %s753_s14 = smov 0   ;;  %s755_s15 = smov 0  }
   0x5   :  { %s757_s16 = smov 0   ;;  %s759_s17 = smov 0  }
   0x6 LB: > { %s464_s18 = sadd.s32 4294967295, %s721_s17   ;;  %s465_s19 = sadd.s32 4294967294, %s721_s17   ;;  %s721_s17 = sphi %s759_s17, %s18_s17   ;;  %s717_s16 = sphi %s757_s16, %s959_s16   ;;  %s713_s15 = sphi %s755_s15, %s958_s15   ;;  %s709_s14 = sphi %s753_s14, %s957_s14   ;;  %s705_s13 = sphi %s751_s13, %s956_s13   ;;  %s701_s12 = sphi %s749_s12, %s955_s12  }
   0x7   : > { %s30_s20 = sadd.s32 1, %s717_s16  ;;  %s126_s21 = sadd.s32 1, %s709_s14 }
   0x8   : > { %p31_p0 = scmp.ge.s32.totalorder %s30_s20, 4  ;;  %p136_p1 = scmp.ne.s32.totalorder %s709_s14, %s705_s13 }
   0x9   : > { %p137_p2 = scmp.eq.s32.totalorder %s464_s18, 3  ;;  %p142_p3 = scmp.ne.s32.totalorder %s705_s13, %s701_s12 }
   0xa   : > { %s961_s20 = smov (%p31_p0, %s30_s20), 0  ;;  %p143_p5 = scmp.eq.s32.totalorder %s465_s19, 3 }
   0xb   : > { %p789_p4 = por %p137_p2, %p136_p1  ;;  %s122_s23 = ssub.s32 %s717_s16, %s961_s20 }
   0xc   : > { %p466_p6 = scmp.ge.s32.totalorder %s721_s17, 1  ;;  %p124_p7 = scmp.eq.s32.totalorder %s122_s23, 0 }
   0xd   : > { %s946_s22 = scalar_select %p789_p4, 1, 0 }
   0xe   : > { %p796_p8 = por %p143_p5, %p142_p3  ;;  %p150_p9 = scmp.lt.s32.totalorder %s721_s17, 5 }
   0xf   : > { %s802_s25 = scalar_select %p124_p7, %s709_s14, %s126_s21  }
  0x10   : > { %s947_s24 = scalar_select %p796_p8, 1, 0 }
  0x11   : > { %p804_p10 = pnand %p466_p6, %p150_p9  ;;  %p808_p11 = scmp.eq.s32.totalorder %s464_s18, 0 }
  0x12   : > { %s723_s28 = smov [#allocation3]   ;;  %s724_s30 = smov [#allocation6]  }
  0x13   : > { %s948_s26 = scalar_select %p804_p10, 1, 0 }
  0x14   : > { %s949_s27 = scalar_select %p808_p11, 1, 0 }
  0x15   : > { %p496_p12 = pneg %p804_p10  ;;  %s165_s29 = sshll.u32 %s723_s28, 4  ;;  %s166_s29 = int_to_ptr.vmem [resolvable:$true] %s165_s29 }
  0x16   : > { %s178_s4 = sshll.u32 %s724_s30, 4  ;;  %s579_s8 = scalar_lea.hbm %s938_s0, 64  ;;  %s820_s4 = int_to_ptr.vmem [resolvable:$true] %s178_s4 }
  0x17   : > { %p816_p13 = pnand %p808_p11, %p496_p12  ;;  %p580_p0 = scmp.ne.s32.totalorder %s938_s0, %s579_s8 }
  0x18   : > { %p586_p5 = scmp.lt.u32.totalorder %s579_s8, %s938_s0 }
  0x19   : > { %p581_p1 = pneg %p816_p13 }
  0x1b   : > { %p582_p2 = pnand %p581_p1, %p580_p0 }
  0x1d   : > { %p583_p3 = pneg %p582_p2 }
  0x1f   : > { %p588_p6 = pnand %p586_p5, %p583_p3 }
  0x21   : > { %591 = shalt.err (!%p588_p6)
}
  0x22   : > { %s592_s19 = scalar_lea.vmem %s166_s29, 64  ;;  %p600_p8 = scmp.lt.s32.totalorder %s166_s29, %s166_s29 }
  0x23   : > { %p593_p7 = scmp.ne.s32.totalorder %s166_s29, %s592_s19  ;;  %p601_p4 = scmp.lt.s32.totalorder %s592_s19, %s592_s19 }
  0x25   : > { %p595_p9 = pnand %p593_p7, %p581_p1  ;;  %p602_p11 = por %p601_p4, %p600_p8 }
  0x27   : > { %p596_p12 = pneg %p595_p9 }
  0x29   : > { %p603_p10 = pnand %p602_p11, %p596_p12 }
  0x2b   : > { %606 = shalt.err (!%p603_p10)
}
  0x2c   : > { %499 = dma.hbm_to_vmem [thread:$0]  (!%p816_p13), %s938_s0, 64, %s166_s29, [#allocation4]  }
  0x2d   : > { %s607_s6 = scalar_lea.hbm %s939_s1, 512 }
  0x2e   : > { %p608_p0 = scmp.ne.s32.totalorder %s939_s1, %s607_s6  ;;  %p614_p10 = scmp.lt.u32.totalorder %s607_s6, %s939_s1 }
  0x30   : > { %p610_p4 = pnand %p608_p0, %p581_p1 }
  0x32   : > { %p611_p8 = pneg %p610_p4 }
  0x34   : > { %p616_p11 = pnand %p614_p10, %p611_p8 }
  0x36   : > { %619 = shalt.err (!%p616_p11)
}
  0x37   : > { %s620_s29 = scalar_lea.vmem %s820_s4, 512  ;;  %p628_p6 = scmp.lt.s32.totalorder %s820_s4, %s820_s4 }
  0x38   : > { %p621_p2 = scmp.ne.s32.totalorder %s820_s4, %s620_s29  ;;  %p629_p7 = scmp.lt.s32.totalorder %s620_s29, %s620_s29 }
  0x3a   : > { %p623_p3 = pnand %p621_p2, %p581_p1  ;;  %p630_p9 = por %p629_p7, %p628_p6 }
  0x3c   : > { %p624_p5 = pneg %p623_p3 }
  0x3e   : > { %p631_p12 = pnand %p630_p9, %p624_p5 }
  0x40   : > { %634 = shalt.err (!%p631_p12)
}
  0x41   : > { %s725_s11 = smov 128   ;;  %s726_s18 = smov 8  }
  0x42   : > { %502 = dma.hbm_to_vmem [thread:$0]  (!%p816_p13), %s939_s1, 512, %s820_s4, [#allocation7], %s725_s11, %s725_s11, %s726_s18  }
  0x43   : > { %p951_p0 = scmp.ne.s32.totalorder %s948_s26, 0 }
  0x44   : > { %p952_p1 = scmp.ne.s32.totalorder (!%p951_p0), %s949_s27, 0 }
  0x45   : > { %202 = sbr.rel (%p951_p0) target bundleno = 364 (0x16c), region = 32 }
  0x4c   : > { %688 = dma.done.wait (%p952_p1), [#allocation4], 64  }
  0x4d   : > { %690 = vsyncadd (%p952_p1), [#allocation4], 4294967232 }
  0x4e   : > { %692 = dma.done.wait (%p952_p1), [#allocation7], 512  }
  0x4f   : > { %694 = vsyncadd (%p952_p1), [#allocation7], 4294966784  ;;  %s226_s5 = sand.u32 1, %s705_s13   ;;  %p474_p13 = scmp.ne.s32.totalorder %s713_s15, 0 }
  0x50   : > { %s473_s4 = sshll.u32 %s226_s5, 4  ;;  %v565_v0 = vld [vmem:[#allocation6 + $0x4] ss:$8 sps:$4 sm:$0xff] (!%p474_p13)   ;;  %v567_v1 = vld [vmem:[#allocation6] ss:$8 sps:$4 sm:$0xff] (!%p474_p13)   ;;  %v727_v2 = vmov (!%p474_p13), 0   ;;  %v249_v6 = vlaneseq (!%p474_p13) }
  0x51   : > { %s882_s23 = scalar_lea.vmem [#allocation8], %s473_s4  ;;  %241 = sbr.rel (%p474_p13) target bundleno = 339 (0x153), region = 44  ;;  %315 = vmatprep.mubr.bf16.mxu0 (!%p474_p13), %v727_v2  ;;  %283 = vmatprep.subr.bf16.mxu0 (!%p474_p13), %v565_v0  ;;  %v568_v3 = vld [vmem:[#allocation6 + $0x14] ss:$8 sps:$4 sm:$0xff] (!%p474_p13)   ;;  %v570_v4 = vld [vmem:[#allocation6 + $0x10] ss:$8 sps:$4 sm:$0xff] (!%p474_p13)  }
  0x52   : > { %284 = vmatpush1.bf16.msra.mxu0 (!%p474_p13), %v567_v1  ;;  %v242_v5 = vld [vmem:[#allocation3] sm:$0xf] (!%p474_p13)  ;;  %vm279_vm0 = vcmask (!%p474_p13), 261120   ;;  %v250_v7 = vshrl.u32 (!%p474_p13), %v249_v6, 7  ;;  %v247_v9 = vld [vmem:[%s940_s2] sm:$0x3] (!%p474_p13) }
  0x53   : > { %285 = vmatprep.subr.bf16.mxu0 (!%p474_p13), %v568_v3 }
  0x54   : > { %v251_v8 = vsub.s32 (!%p474_p13), 0, %v250_v7  ;;  %v255_v10 = vsub.s32 (!%p474_p13), 1, %v250_v7 }
  0x56   : > { %286 = vmatpush1.bf16.msra.mxu0 (!%p474_p13), %v570_v4  ;;  %v252_v11 = vrot.slane (!%p474_p13), %v247_v9, %v251_v8  ;;  %v256_v12 = vrot.slane (!%p474_p13), %v247_v9, %v255_v10 }
  0x59   : > { %479 = vmatmul.mubr.msk.bf16.vlgmr.msra.gmra.mrb[0].mxu0 %vm279_vm0, %v242_v5 }
 0x12c   : > { %v317_v13 = vpop.f32.mrb[0].mxu0 }
 0x12d   : > { %v318_v14 = vadd.f32 %v317_v13, %v252_v11  ;;  %v319_v15 = vpop.f32.mrb[1].mxu0 }
 0x12e   : > { %v320_v16 = vadd.f32 %v319_v15, %v256_v12  ;;  %v321_v17 = vpop.f32.mrb[2].mxu0 }
 0x12f   : > { %v324_v18 = vsub.f32 %v318_v14, %v318_v14  ;;  %v322_v19 = vpop.f32.mrb[3].mxu0 }
 0x130   : > { %v325_v20 = vsub.f32 %v320_v16, %v320_v16 }
 0x131   : > { %v326_v21 = vmul.f32 1.442695, %v324_v18 }
 0x132   : > { %v328_v22 = vmul.f32 1.442695, %v325_v20 }
 0x133   : > { %571 = vpow2.f32 %v326_v21 }
 0x134   : > { %573 = vpow2.f32 %v328_v22 }
 0x13d   : > { %v572_v23 = vpop.eup %571 }
 0x13e   : > { %v574_v24 = vpop.eup %573  ;;  %v330_v25 = vmul.f32 4.0, %v572_v23 }
 0x13f   : > { %v331_v26 = vmul.f32 4.0, %v574_v24 }
 0x140   : > { %575 = vlog2.f32 %v330_v25 }
 0x141   : > { %577 = vlog2.f32 %v331_v26 }
 0x14a   : > { %v576_v27 = vpop.eup %575 }
 0x14b   : > { %v578_v28 = vpop.eup %577  ;;  %v333_v29 = vmul.f32 0.6931472, %v576_v27 }
 0x14c   : > { %v335_v30 = vmul.f32 0.6931472, %v578_v28 }
 0x14d   : > { %v336_v31 = vadd.f32 %v333_v29, %v318_v14 }
 0x14e   : > { %v337_v32 = vadd.f32 %v335_v30, %v320_v16 }
 0x14f   : > { %v338_v33 = vsub.f32 %v318_v14, %v336_v31 }
 0x150   : > { %v339_v34 = vsub.f32 %v320_v16, %v337_v32 }
 0x151   : > { %340 = vst [vmem:[#allocation2] sm:$0xff] %v338_v33 }
 0x152   : > { %341 = vst [vmem:[#allocation2 + $0x8] sm:$0xff] %v339_v34 }
 0x153 PF: > { %s485_s28 = sshll.u32 %s713_s15, 8  ;;  %s364_s8 = sshll.u32 %s882_s23, 4  ;;  %s365_s8 = int_to_ptr.vmem [resolvable:$true] %s364_s8 }
 0x154   : > { %s894_s7 = scalar_lea.hbm %s941_s3, %s485_s28  ;;  %s347_s9 = scalar_lea.sflag [#allocation5], %s226_s5 }
 0x155   : > { %s635_s10 = scalar_lea.vmem %s365_s8, 256  ;;  %p953_p8 = scmp.ne.s32.totalorder %s946_s22, 0 }
 0x156   : > { %p636_p4 = scmp.ne.s32.totalorder %s365_s8, %s635_s10  ;;  %s728_s29 = smov [#allocation8]  }
 0x157   : > { %s639_s11 = sshll.u32 %s728_s29, 4  ;;  %s640_s11 = int_to_ptr.vmem [resolvable:$false] %s639_s11 }
 0x158   : > { %v342_v35 = vld [vmem:[#allocation2] sm:$0xff]  ;;  %p637_p10 = pnand %p636_p4, %p953_p8  ;;  %s641_s15 = scalar_lea.vmem %s640_s11, 512 }
 0x159   : > { %v343_v36 = vld [vmem:[#allocation2 + $0x8] sm:$0xff]  ;;  %344 = vst [vmem:[%s882_s23] sm:$0xff] %v342_v35  ;;  %p642_p2 = scmp.lt.s32.totalorder %s365_s8, %s640_s11  ;;  %p643_p3 = scmp.lt.s32.totalorder %s641_s15, %s635_s10 }
 0x15a   : > { %345 = vst [vmem:[%s882_s23 + $0x8] sm:$0xff] %v343_v36  ;;  %p638_p11 = pneg %p637_p10 }
 0x15b   : > { %p644_p5 = por %p643_p3, %p642_p2 }
 0x15d   : > { %p645_p6 = pnand %p644_p5, %p638_p11 }
 0x15f   : > { %648 = shalt.err (!%p645_p6)
}
 0x160   : > { %s649_s18 = scalar_lea.hbm %s894_s7, 256  ;;  %s653_s5 = scalar_lea.hbm %s941_s3, 1024 }
 0x161   : > { %p650_p7 = scmp.ne.s32.totalorder %s894_s7, %s649_s18  ;;  %p654_p0 = scmp.lt.u32.totalorder %s894_s7, %s941_s3 }
 0x162   : > { %p655_p1 = scmp.lt.u32.totalorder %s653_s5, %s649_s18  ;;  %p657_p4 = scmp.lt.u32.totalorder %s649_s18, %s894_s7 }
 0x163   : > { %p651_p9 = pnand %p650_p7, %p953_p8 }
 0x164   : > { %p656_p13 = por %p655_p1, %p654_p0 }
 0x165   : > { %p652_p12 = pneg %p651_p9 }
 0x166   : > { %p658_p10 = por %p657_p4, %p656_p13 }
 0x168   : > { %p659_p11 = pnand %p658_p10, %p652_p12 }
 0x16a   : > { %662 = shalt.err (!%p659_p11)
}
 0x16b   : > { %494 = dma.vmem_to_hbm [thread:$0]  (%p953_p8), %s365_s8, 256, %s894_s7, %s347_s9  }
 0x16c PF: > { %p511_p2 = scmp.ge.s32.totalorder %s721_s17, 2  ;;  %s376_s26 = sand.u32 1, %s701_s12  }
 0x16d   : > { %p954_p3 = scmp.ne.s32.totalorder %s947_s24, 0  ;;  %s377_s27 = scalar_lea.sflag [#allocation5], %s376_s26 }
 0x16f   : > { %p504_p5 = pnand %p511_p2, %p954_p3 }
 0x171   : > { %696 = dma.done.wait (!%p504_p5), %s377_s27, 256  }
 0x172   : > { %698 = vsyncadd (!%p504_p5), %s377_s27, 4294967040  ;;  %s18_s17 = sadd.s32 1, %s721_s17   ;;  %s955_s12 = smov %s705_s13 }
 0x173   : > { %p15_p6 = scmp.ge.s32.totalorder %s18_s17, 6   ;;  %s956_s13 = smov %s709_s14 }
 0x174   : > { %s957_s14 = smov %s802_s25  ;;  %s958_s15 = smov %s717_s16 }
 0x175   : > { %s959_s16 = smov %s961_s20  ;;  %17 = sbr.rel (!%p15_p6) target bundleno = 6 (0x6), region = 82 }
 0x17c   :  { %382 = vsyncpa [#allocation4], 1 }
 0x17d   :  { %384 = vsyncpa [#allocation4 + $0x1], 1 }
 0x17e   :  { %385 = vsyncpa [#allocation7], 1 }
 0x17f   :  { %386 = vsyncpa [#allocation5], 1 }
 0x180   :  { %388 = vsyncpa [#allocation5 + $0x1], 1 }

</bundles_post_ra>
